<compile_context>
chip_gen: v6e
topology: v6e:2x2x1
jax: 0.10.0
libtpu: 0.0.40
codegen_flags: <defaults>
</compile_context>

<pallas_src>
import functools

import jax
import jax.numpy as jnp
import numpy as np
from jax.experimental import pallas as pl
from jax.experimental.pallas import tpu as pltpu


def lstm_kernel(x_ref, wih_ref, whh_ref, b_ref, h0_ref, c0_ref,
                out_ref, hn_ref, cn_ref, *, seq_len, batch, hidden, approx_recip):
    # x_ref:   (T*B, D)      time-major flattened input (matmul dtype)
    # wih_ref: (D, 4H)       input weights, transposed (gate order i,f,g,o)
    # whh_ref: (H, 4H)       recurrent weights, transposed
    # b_ref:   (1, 4H)       b_ih + b_hh (f32)
    # h0/c0:   (B, H)        initial state (f32)
    # out_ref: (T, B, H)     time-major hidden states (aligned per-step stores)
    # hn/cn:   (B, H)
    H = hidden
    B = batch

    # (1) All T input projections as ONE lane-dense MXU matmul (+ fused bias),
    #     kept as a VALUE: no VMEM scratch store/load on the serial chain.
    gx = jnp.dot(x_ref[...], wih_ref[...],
                 preferred_element_type=jnp.float32) + b_ref[...]    # (T*B, 4H) f32

    whh = whh_ref[...]                 # (H, 4H): identical RHS for every step
    h = h0_ref[...].astype(jnp.float32)
    c = c0_ref[...].astype(jnp.float32)

    def sigmoid_full(v):
        # Full-width pass: exp and reciprocal both ride the EUP slot.
        return pl.reciprocal(1.0 + jnp.exp(-v), approx=approx_recip)

    # (2) Sequential recurrence: T small & static -> fully unrolled, one
    #     (B, 4H) lane-dense MXU matmul per step (bf16 operands, f32 acc).
    for t in range(seq_len):
        gates = gx[t * B:(t + 1) * B, :] + jnp.dot(
            h.astype(whh.dtype), whh, preferred_element_type=jnp.float32)  # (B, 4H)
        sig = sigmoid_full(gates)      # one full-width sigmoid pass
        th = jnp.tanh(gates)           # one full-width tanh pass
        i = sig[:, 0 * H:1 * H]
        f = sig[:, 1 * H:2 * H]
        g = th[:, 2 * H:3 * H]
        o = sig[:, 3 * H:4 * H]
        c = f * c + i * g
        h = o * jnp.tanh(c)
        out_ref[t] = h.astype(out_ref.dtype)     # sublane-0-aligned store, tile t

    hn_ref[...] = h.astype(hn_ref.dtype)
    cn_ref[...] = c.astype(cn_ref.dtype)


def lstm_forward(x, w_ih, w_hh, b_ih, b_hh, hidden=None, *,
                 matmul_dtype=jnp.bfloat16):
    """Equivalent of nn.LSTM(inLSTM, hidLSTM, batch_first=True) forward.

    x: (B, T, D);  w_ih: (4H, D);  w_hh: (4H, H);  b_ih, b_hh: (4H,)
    Returns (output, (h_n, c_n)) with output (B, T, H), h_n/c_n (1, B, H).
    matmul_dtype: operand dtype for the MXU matmuls (state math stays f32).
    """
    B, T, D = x.shape
    H = w_hh.shape[1]
    assert w_ih.shape == (4 * H, D) and w_hh.shape == (4 * H, H)

    if hidden is None:
        h0 = jnp.zeros((B, H), jnp.float32)
        c0 = jnp.zeros((B, H), jnp.float32)
    else:
        h0 = jnp.asarray(hidden[0], jnp.float32).reshape(B, H)
        c0 = jnp.asarray(hidden[1], jnp.float32).reshape(B, H)

    # Layout plumbing in the wrapper (not in the kernel):
    # time-major flatten so the input projection is a single lane-dense matmul.
    x_tm = jnp.transpose(x, (1, 0, 2)).reshape(T * B, D).astype(matmul_dtype)
    w_ih_t = jnp.transpose(w_ih).astype(matmul_dtype)     # (D, 4H)
    w_hh_t = jnp.transpose(w_hh).astype(matmul_dtype)     # (H, 4H)
    b = (b_ih + b_hh).reshape(1, 4 * H).astype(jnp.float32)

    approx_recip = bool(jnp.dtype(matmul_dtype) == jnp.dtype(jnp.bfloat16))

    flops = int(2 * T * B * D * 4 * H + T * (2 * B * H * 4 * H) + 10 * T * B * H)
    transcendentals = int(T * (3 * B * 4 * H + B * H))     # exp+recip+tanh full width, tanh(c)
    bytes_accessed = int(
        x_tm.dtype.itemsize * x_tm.size
        + w_ih_t.dtype.itemsize * w_ih_t.size
        + w_hh_t.dtype.itemsize * w_hh_t.size
        + 4 * (b.size + 4 * B * H + T * B * H))

    vmem = pl.BlockSpec(memory_space=pltpu.MemorySpace.VMEM)
    out_tbh, h_n, c_n = pl.pallas_call(
        functools.partial(lstm_kernel, seq_len=T, batch=B, hidden=H,
                          approx_recip=approx_recip),
        out_shape=(
            jax.ShapeDtypeStruct((T, B, H), jnp.float32),
            jax.ShapeDtypeStruct((B, H), jnp.float32),
            jax.ShapeDtypeStruct((B, H), jnp.float32),
        ),
        in_specs=[vmem] * 6,
        out_specs=(vmem, vmem, vmem),
        cost_estimate=pl.CostEstimate(
            flops=flops, transcendentals=transcendentals,
            bytes_accessed=bytes_accessed),
    )(x_tm, w_ih_t, w_hh_t, b, h0, c0)

    out = jnp.transpose(out_tbh, (1, 0, 2))   # (B, T, H), batch_first
    return out, (h_n[None], c_n[None])


def lstm_ref(x, w_ih, w_hh, b_ih, b_hh):
    """Pure-JAX reference of PyTorch nn.LSTM forward (zero initial state)."""
    B, T, D = x.shape
    H = w_hh.shape[1]
    h = jnp.zeros((B, H), jnp.float32)
    c = jnp.zeros((B, H), jnp.float32)

    def step(carry, x_t):
        h, c = carry
        gates = x_t @ w_ih.T + b_ih + h @ w_hh.T + b_hh
        i, f, g, o = jnp.split(gates, 4, axis=-1)
        i = jax.nn.sigmoid(i)
        f = jax.nn.sigmoid(f)
        g = jnp.tanh(g)
        o = jax.nn.sigmoid(o)
        c = f * c + i * g
        h = o * jnp.tanh(c)
        return (h, c), h

    (h_n, c_n), ys = jax.lax.scan(step, (h, c), jnp.transpose(x, (1, 0, 2)))
    return jnp.transpose(ys, (1, 0, 2)), h_n, c_n


if __name__ == "__main__":
    # Module hyper-parameters (constructor args of LSTM): inLSTM, hidLSTM
    inLSTM = 4
    hidLSTM = 32
    B, T = 2, 8

    key = jax.random.PRNGKey(0)
    kx, k1, k2, k3, k4 = jax.random.split(key, 5)
    x = jax.random.normal(kx, (B, T, inLSTM), dtype=jnp.float32)

    # PyTorch nn.LSTM default init: uniform(-1/sqrt(H), 1/sqrt(H))
    bound = 1.0 / np.sqrt(hidLSTM)
    w_ih = jax.random.uniform(k1, (4 * hidLSTM, inLSTM),
                              minval=-bound, maxval=bound, dtype=jnp.float32)
    w_hh = jax.random.uniform(k2, (4 * hidLSTM, hidLSTM),
                              minval=-bound, maxval=bound, dtype=jnp.float32)
    b_ih = jax.random.uniform(k3, (4 * hidLSTM,),
                              minval=-bound, maxval=bound, dtype=jnp.float32)
    b_hh = jax.random.uniform(k4, (4 * hidLSTM,),
                              minval=-bound, maxval=bound, dtype=jnp.float32)

    ref_out, ref_h, ref_c = lstm_ref(x, w_ih, w_hh, b_ih, b_hh)

    # (a) Strict-precision path (f32 matmul operands, exact reciprocal).
    out32, (h32, c32) = lstm_forward(x, w_ih, w_hh, b_ih, b_hh,
                                     matmul_dtype=jnp.float32)
    out32, h32, c32 = jax.block_until_ready((out32, h32, c32))
    np.testing.assert_allclose(np.asarray(out32), np.asarray(ref_out),
                               rtol=1e-4, atol=1e-4)
    np.testing.assert_allclose(np.asarray(h32[0]), np.asarray(ref_h),
                               rtol=1e-4, atol=1e-4)
    np.testing.assert_allclose(np.asarray(c32[0]), np.asarray(ref_c),
                               rtol=1e-4, atol=1e-4)

    # (b) Performance path (bf16 MXU operands, f32 accumulation) — looser check.
    out, (h_n, c_n) = lstm_forward(x, w_ih, w_hh, b_ih, b_hh)
    out, h_n, c_n = jax.block_until_ready((out, h_n, c_n))
    np.testing.assert_allclose(np.asarray(out), np.asarray(ref_out),
                               rtol=3e-2, atol=3e-2)
    np.testing.assert_allclose(np.asarray(h_n[0]), np.asarray(ref_h),
                               rtol=3e-2, atol=3e-2)
    np.testing.assert_allclose(np.asarray(c_n[0]), np.asarray(ref_c),
                               rtol=3e-2, atol=3e-2)

    print("KERNEL_OK")
</pallas_src>

<mosaic_0001>
module attributes {stable_mosaic.version = 11 : i64} {
  func.func @lstm_kernel(%arg0: memref<16x4xf32, #tpu.memory_space<vmem>>, %arg1: memref<4x128xf32, #tpu.memory_space<vmem>>, %arg2: memref<32x128xf32, #tpu.memory_space<vmem>>, %arg3: memref<1x128xf32, #tpu.memory_space<vmem>>, %arg4: memref<2x32xf32, #tpu.memory_space<vmem>>, %arg5: memref<2x32xf32, #tpu.memory_space<vmem>>, %arg6: memref<8x2x32xf32, #tpu.memory_space<vmem>>, %arg7: memref<2x32xf32, #tpu.memory_space<vmem>>, %arg8: memref<2x32xf32, #tpu.memory_space<vmem>>) attributes {dimension_semantics = [], scalar_prefetch = 0 : i64, scratch_operands = 0 : i64, tpu.core_type = #tpu.core_type<tc>} {
    %c0 = arith.constant 0 : index
    %c0_0 = arith.constant 0 : index
    %0 = vector.load %arg0[%c0, %c0_0] : memref<16x4xf32, #tpu.memory_space<vmem>>, vector<16x4xf32>
    %c0_1 = arith.constant 0 : index
    %c0_2 = arith.constant 0 : index
    %1 = vector.load %arg1[%c0_1, %c0_2] : memref<4x128xf32, #tpu.memory_space<vmem>>, vector<4x128xf32>
    %cst = arith.constant dense<0.000000e+00> : vector<16x128xf32>
    %2 = tpu.matmul %0, %1, %cst {dimension_numbers = #tpu.dot_dimension_numbers<[1], [0], [0], [1], [0, 0, 1, 1], [], []>} : vector<16x4xf32>, vector<4x128xf32>, vector<16x128xf32> -> vector<16x128xf32>
    %c0_3 = arith.constant 0 : index
    %c0_4 = arith.constant 0 : index
    %3 = vector.load %arg3[%c0_3, %c0_4] : memref<1x128xf32, #tpu.memory_space<vmem>>, vector<1x128xf32>
    %4 = vector.broadcast %3 : vector<1x128xf32> to vector<16x128xf32>
    %5 = arith.addf %2, %4 : vector<16x128xf32>
    %c0_5 = arith.constant 0 : index
    %c0_6 = arith.constant 0 : index
    %6 = vector.load %arg2[%c0_5, %c0_6] : memref<32x128xf32, #tpu.memory_space<vmem>>, vector<32x128xf32>
    %c0_7 = arith.constant 0 : index
    %c0_8 = arith.constant 0 : index
    %7 = vector.load %arg4[%c0_7, %c0_8] : memref<2x32xf32, #tpu.memory_space<vmem>>, vector<2x32xf32>
    %c0_9 = arith.constant 0 : index
    %c0_10 = arith.constant 0 : index
    %8 = vector.load %arg5[%c0_9, %c0_10] : memref<2x32xf32, #tpu.memory_space<vmem>>, vector<2x32xf32>
    %9 = vector.extract_strided_slice %5 {offsets = [0, 0], sizes = [2, 128], strides = [1, 1]} : vector<16x128xf32> to vector<2x128xf32>
    %cst_11 = arith.constant dense<0.000000e+00> : vector<2x128xf32>
    %10 = tpu.matmul %7, %6, %cst_11 {dimension_numbers = #tpu.dot_dimension_numbers<[1], [0], [0], [1], [0, 0, 1, 1], [], []>} : vector<2x32xf32>, vector<32x128xf32>, vector<2x128xf32> -> vector<2x128xf32>
    %11 = arith.addf %9, %10 : vector<2x128xf32>
    %cst_12 = arith.constant 0.000000e+00 : f32
    %12 = vector.broadcast %cst_12 : f32 to vector<2x128xf32>
    %13 = arith.subf %12, %11 : vector<2x128xf32>
    %14 = math.exp %13 : vector<2x128xf32>
    %cst_13 = arith.constant 1.000000e+00 : f32
    %15 = vector.broadcast %cst_13 : f32 to vector<2x128xf32>
    %16 = arith.addf %15, %14 : vector<2x128xf32>
    %17 = tpu.reciprocal %16 : vector<2x128xf32> -> vector<2x128xf32>
    %18 = math.tanh %11 : vector<2x128xf32>
    %19 = vector.extract_strided_slice %17 {offsets = [0, 0], sizes = [2, 32], strides = [1, 1]} : vector<2x128xf32> to vector<2x32xf32>
    %20 = vector.extract_strided_slice %17 {offsets = [0, 32], sizes = [2, 32], strides = [1, 1]} : vector<2x128xf32> to vector<2x32xf32>
    %21 = vector.extract_strided_slice %18 {offsets = [0, 64], sizes = [2, 32], strides = [1, 1]} : vector<2x128xf32> to vector<2x32xf32>
    %22 = vector.extract_strided_slice %17 {offsets = [0, 96], sizes = [2, 32], strides = [1, 1]} : vector<2x128xf32> to vector<2x32xf32>
    %23 = arith.mulf %20, %8 : vector<2x32xf32>
    %24 = arith.mulf %19, %21 : vector<2x32xf32>
    %25 = arith.addf %23, %24 : vector<2x32xf32>
    %26 = math.tanh %25 : vector<2x32xf32>
    %27 = arith.mulf %22, %26 : vector<2x32xf32>
    %c0_14 = arith.constant 0 : index
    %c0_15 = arith.constant 0 : index
    %c0_16 = arith.constant 0 : index
    %28 = vector.load %arg6[%c0_14, %c0_15, %c0_16] : memref<8x2x32xf32, #tpu.memory_space<vmem>>, vector<1x2x32xf32>
    %29 = vector.shape_cast %28 : vector<1x2x32xf32> to vector<2x32xf32>
    %30 = vector.shape_cast %27 : vector<2x32xf32> to vector<1x2x32xf32>
    tpu.vector_store %arg6[%c0_14, %c0_15, %c0_16], %30 {strides = array<i32>} : memref<8x2x32xf32, #tpu.memory_space<vmem>>, vector<1x2x32xf32>,
    %31 = vector.extract_strided_slice %5 {offsets = [2, 0], sizes = [2, 128], strides = [1, 1]} : vector<16x128xf32> to vector<2x128xf32>
    %cst_17 = arith.constant dense<0.000000e+00> : vector<2x128xf32>
    %32 = tpu.matmul %27, %6, %cst_17 {dimension_numbers = #tpu.dot_dimension_numbers<[1], [0], [0], [1], [0, 0, 1, 1], [], []>} : vector<2x32xf32>, vector<32x128xf32>, vector<2x128xf32> -> vector<2x128xf32>
    %33 = arith.addf %31, %32 : vector<2x128xf32>
    %cst_18 = arith.constant 0.000000e+00 : f32
    %34 = vector.broadcast %cst_18 : f32 to vector<2x128xf32>
    %35 = arith.subf %34, %33 : vector<2x128xf32>
    %36 = math.exp %35 : vector<2x128xf32>
    %cst_19 = arith.constant 1.000000e+00 : f32
    %37 = vector.broadcast %cst_19 : f32 to vector<2x128xf32>
    %38 = arith.addf %37, %36 : vector<2x128xf32>
    %39 = tpu.reciprocal %38 : vector<2x128xf32> -> vector<2x128xf32>
    %40 = math.tanh %33 : vector<2x128xf32>
    %41 = vector.extract_strided_slice %39 {offsets = [0, 0], sizes = [2, 32], strides = [1, 1]} : vector<2x128xf32> to vector<2x32xf32>
    %42 = vector.extract_strided_slice %39 {offsets = [0, 32], sizes = [2, 32], strides = [1, 1]} : vector<2x128xf32> to vector<2x32xf32>
    %43 = vector.extract_strided_slice %40 {offsets = [0, 64], sizes = [2, 32], strides = [1, 1]} : vector<2x128xf32> to vector<2x32xf32>
    %44 = vector.extract_strided_slice %39 {offsets = [0, 96], sizes = [2, 32], strides = [1, 1]} : vector<2x128xf32> to vector<2x32xf32>
    %45 = arith.mulf %42, %25 : vector<2x32xf32>
    %46 = arith.mulf %41, %43 : vector<2x32xf32>
    %47 = arith.addf %45, %46 : vector<2x32xf32>
    %48 = math.tanh %47 : vector<2x32xf32>
    %49 = arith.mulf %44, %48 : vector<2x32xf32>
    %c1 = arith.constant 1 : index
    %c0_20 = arith.constant 0 : index
    %c0_21 = arith.constant 0 : index
    %50 = vector.load %arg6[%c1, %c0_20, %c0_21] : memref<8x2x32xf32, #tpu.memory_space<vmem>>, vector<1x2x32xf32>
    %51 = vector.shape_cast %50 : vector<1x2x32xf32> to vector<2x32xf32>
    %52 = vector.shape_cast %49 : vector<2x32xf32> to vector<1x2x32xf32>
    tpu.vector_store %arg6[%c1, %c0_20, %c0_21], %52 {strides = array<i32>} : memref<8x2x32xf32, #tpu.memory_space<vmem>>, vector<1x2x32xf32>,
    %53 = vector.extract_strided_slice %5 {offsets = [4, 0], sizes = [2, 128], strides = [1, 1]} : vector<16x128xf32> to vector<2x128xf32>
    %cst_22 = arith.constant dense<0.000000e+00> : vector<2x128xf32>
    %54 = tpu.matmul %49, %6, %cst_22 {dimension_numbers = #tpu.dot_dimension_numbers<[1], [0], [0], [1], [0, 0, 1, 1], [], []>} : vector<2x32xf32>, vector<32x128xf32>, vector<2x128xf32> -> vector<2x128xf32>
    %55 = arith.addf %53, %54 : vector<2x128xf32>
    %cst_23 = arith.constant 0.000000e+00 : f32
    %56 = vector.broadcast %cst_23 : f32 to vector<2x128xf32>
    %57 = arith.subf %56, %55 : vector<2x128xf32>
    %58 = math.exp %57 : vector<2x128xf32>
    %cst_24 = arith.constant 1.000000e+00 : f32
    %59 = vector.broadcast %cst_24 : f32 to vector<2x128xf32>
    %60 = arith.addf %59, %58 : vector<2x128xf32>
    %61 = tpu.reciprocal %60 : vector<2x128xf32> -> vector<2x128xf32>
    %62 = math.tanh %55 : vector<2x128xf32>
    %63 = vector.extract_strided_slice %61 {offsets = [0, 0], sizes = [2, 32], strides = [1, 1]} : vector<2x128xf32> to vector<2x32xf32>
    %64 = vector.extract_strided_slice %61 {offsets = [0, 32], sizes = [2, 32], strides = [1, 1]} : vector<2x128xf32> to vector<2x32xf32>
    %65 = vector.extract_strided_slice %62 {offsets = [0, 64], sizes = [2, 32], strides = [1, 1]} : vector<2x128xf32> to vector<2x32xf32>
    %66 = vector.extract_strided_slice %61 {offsets = [0, 96], sizes = [2, 32], strides = [1, 1]} : vector<2x128xf32> to vector<2x32xf32>
    %67 = arith.mulf %64, %47 : vector<2x32xf32>
    %68 = arith.mulf %63, %65 : vector<2x32xf32>
    %69 = arith.addf %67, %68 : vector<2x32xf32>
    %70 = math.tanh %69 : vector<2x32xf32>
    %71 = arith.mulf %66, %70 : vector<2x32xf32>
    %c2 = arith.constant 2 : index
    %c0_25 = arith.constant 0 : index
    %c0_26 = arith.constant 0 : index
    %72 = vector.load %arg6[%c2, %c0_25, %c0_26] : memref<8x2x32xf32, #tpu.memory_space<vmem>>, vector<1x2x32xf32>
    %73 = vector.shape_cast %72 : vector<1x2x32xf32> to vector<2x32xf32>
    %74 = vector.shape_cast %71 : vector<2x32xf32> to vector<1x2x32xf32>
    tpu.vector_store %arg6[%c2, %c0_25, %c0_26], %74 {strides = array<i32>} : memref<8x2x32xf32, #tpu.memory_space<vmem>>, vector<1x2x32xf32>,
    %75 = vector.extract_strided_slice %5 {offsets = [6, 0], sizes = [2, 128], strides = [1, 1]} : vector<16x128xf32> to vector<2x128xf32>
    %cst_27 = arith.constant dense<0.000000e+00> : vector<2x128xf32>
    %76 = tpu.matmul %71, %6, %cst_27 {dimension_numbers = #tpu.dot_dimension_numbers<[1], [0], [0], [1], [0, 0, 1, 1], [], []>} : vector<2x32xf32>, vector<32x128xf32>, vector<2x128xf32> -> vector<2x128xf32>
    %77 = arith.addf %75, %76 : vector<2x128xf32>
    %cst_28 = arith.constant 0.000000e+00 : f32
    %78 = vector.broadcast %cst_28 : f32 to vector<2x128xf32>
    %79 = arith.subf %78, %77 : vector<2x128xf32>
    %80 = math.exp %79 : vector<2x128xf32>
    %cst_29 = arith.constant 1.000000e+00 : f32
    %81 = vector.broadcast %cst_29 : f32 to vector<2x128xf32>
    %82 = arith.addf %81, %80 : vector<2x128xf32>
    %83 = tpu.reciprocal %82 : vector<2x128xf32> -> vector<2x128xf32>
    %84 = math.tanh %77 : vector<2x128xf32>
    %85 = vector.extract_strided_slice %83 {offsets = [0, 0], sizes = [2, 32], strides = [1, 1]} : vector<2x128xf32> to vector<2x32xf32>
    %86 = vector.extract_strided_slice %83 {offsets = [0, 32], sizes = [2, 32], strides = [1, 1]} : vector<2x128xf32> to vector<2x32xf32>
    %87 = vector.extract_strided_slice %84 {offsets = [0, 64], sizes = [2, 32], strides = [1, 1]} : vector<2x128xf32> to vector<2x32xf32>
    %88 = vector.extract_strided_slice %83 {offsets = [0, 96], sizes = [2, 32], strides = [1, 1]} : vector<2x128xf32> to vector<2x32xf32>
    %89 = arith.mulf %86, %69 : vector<2x32xf32>
    %90 = arith.mulf %85, %87 : vector<2x32xf32>
    %91 = arith.addf %89, %90 : vector<2x32xf32>
    %92 = math.tanh %91 : vector<2x32xf32>
    %93 = arith.mulf %88, %92 : vector<2x32xf32>
    %c3 = arith.constant 3 : index
    %c0_30 = arith.constant 0 : index
    %c0_31 = arith.constant 0 : index
    %94 = vector.load %arg6[%c3, %c0_30, %c0_31] : memref<8x2x32xf32, #tpu.memory_space<vmem>>, vector<1x2x32xf32>
    %95 = vector.shape_cast %94 : vector<1x2x32xf32> to vector<2x32xf32>
    %96 = vector.shape_cast %93 : vector<2x32xf32> to vector<1x2x32xf32>
    tpu.vector_store %arg6[%c3, %c0_30, %c0_31], %96 {strides = array<i32>} : memref<8x2x32xf32, #tpu.memory_space<vmem>>, vector<1x2x32xf32>,
    %97 = vector.extract_strided_slice %5 {offsets = [8, 0], sizes = [2, 128], strides = [1, 1]} : vector<16x128xf32> to vector<2x128xf32>
    %cst_32 = arith.constant dense<0.000000e+00> : vector<2x128xf32>
    %98 = tpu.matmul %93, %6, %cst_32 {dimension_numbers = #tpu.dot_dimension_numbers<[1], [0], [0], [1], [0, 0, 1, 1], [], []>} : vector<2x32xf32>, vector<32x128xf32>, vector<2x128xf32> -> vector<2x128xf32>
    %99 = arith.addf %97, %98 : vector<2x128xf32>
    %cst_33 = arith.constant 0.000000e+00 : f32
    %100 = vector.broadcast %cst_33 : f32 to vector<2x128xf32>
    %101 = arith.subf %100, %99 : vector<2x128xf32>
    %102 = math.exp %101 : vector<2x128xf32>
    %cst_34 = arith.constant 1.000000e+00 : f32
    %103 = vector.broadcast %cst_34 : f32 to vector<2x128xf32>
    %104 = arith.addf %103, %102 : vector<2x128xf32>
    %105 = tpu.reciprocal %104 : vector<2x128xf32> -> vector<2x128xf32>
    %106 = math.tanh %99 : vector<2x128xf32>
    %107 = vector.extract_strided_slice %105 {offsets = [0, 0], sizes = [2, 32], strides = [1, 1]} : vector<2x128xf32> to vector<2x32xf32>
    %108 = vector.extract_strided_slice %105 {offsets = [0, 32], sizes = [2, 32], strides = [1, 1]} : vector<2x128xf32> to vector<2x32xf32>
    %109 = vector.extract_strided_slice %106 {offsets = [0, 64], sizes = [2, 32], strides = [1, 1]} : vector<2x128xf32> to vector<2x32xf32>
    %110 = vector.extract_strided_slice %105 {offsets = [0, 96], sizes = [2, 32], strides = [1, 1]} : vector<2x128xf32> to vector<2x32xf32>
    %111 = arith.mulf %108, %91 : vector<2x32xf32>
    %112 = arith.mulf %107, %109 : vector<2x32xf32>
    %113 = arith.addf %111, %112 : vector<2x32xf32>
    %114 = math.tanh %113 : vector<2x32xf32>
    %115 = arith.mulf %110, %114 : vector<2x32xf32>
    %c4 = arith.constant 4 : index
    %c0_35 = arith.constant 0 : index
    %c0_36 = arith.constant 0 : index
    %116 = vector.load %arg6[%c4, %c0_35, %c0_36] : memref<8x2x32xf32, #tpu.memory_space<vmem>>, vector<1x2x32xf32>
    %117 = vector.shape_cast %116 : vector<1x2x32xf32> to vector<2x32xf32>
    %118 = vector.shape_cast %115 : vector<2x32xf32> to vector<1x2x32xf32>
    tpu.vector_store %arg6[%c4, %c0_35, %c0_36], %118 {strides = array<i32>} : memref<8x2x32xf32, #tpu.memory_space<vmem>>, vector<1x2x32xf32>,
    %119 = vector.extract_strided_slice %5 {offsets = [10, 0], sizes = [2, 128], strides = [1, 1]} : vector<16x128xf32> to vector<2x128xf32>
    %cst_37 = arith.constant dense<0.000000e+00> : vector<2x128xf32>
    %120 = tpu.matmul %115, %6, %cst_37 {dimension_numbers = #tpu.dot_dimension_numbers<[1], [0], [0], [1], [0, 0, 1, 1], [], []>} : vector<2x32xf32>, vector<32x128xf32>, vector<2x128xf32> -> vector<2x128xf32>
    %121 = arith.addf %119, %120 : vector<2x128xf32>
    %cst_38 = arith.constant 0.000000e+00 : f32
    %122 = vector.broadcast %cst_38 : f32 to vector<2x128xf32>
    %123 = arith.subf %122, %121 : vector<2x128xf32>
    %124 = math.exp %123 : vector<2x128xf32>
    %cst_39 = arith.constant 1.000000e+00 : f32
    %125 = vector.broadcast %cst_39 : f32 to vector<2x128xf32>
    %126 = arith.addf %125, %124 : vector<2x128xf32>
    %127 = tpu.reciprocal %126 : vector<2x128xf32> -> vector<2x128xf32>
    %128 = math.tanh %121 : vector<2x128xf32>
    %129 = vector.extract_strided_slice %127 {offsets = [0, 0], sizes = [2, 32], strides = [1, 1]} : vector<2x128xf32> to vector<2x32xf32>
    %130 = vector.extract_strided_slice %127 {offsets = [0, 32], sizes = [2, 32], strides = [1, 1]} : vector<2x128xf32> to vector<2x32xf32>
    %131 = vector.extract_strided_slice %128 {offsets = [0, 64], sizes = [2, 32], strides = [1, 1]} : vector<2x128xf32> to vector<2x32xf32>
    %132 = vector.extract_strided_slice %127 {offsets = [0, 96], sizes = [2, 32], strides = [1, 1]} : vector<2x128xf32> to vector<2x32xf32>
    %133 = arith.mulf %130, %113 : vector<2x32xf32>
    %134 = arith.mulf %129, %131 : vector<2x32xf32>
    %135 = arith.addf %133, %134 : vector<2x32xf32>
    %136 = math.tanh %135 : vector<2x32xf32>
    %137 = arith.mulf %132, %136 : vector<2x32xf32>
    %c5 = arith.constant 5 : index
    %c0_40 = arith.constant 0 : index
    %c0_41 = arith.constant 0 : index
    %138 = vector.load %arg6[%c5, %c0_40, %c0_41] : memref<8x2x32xf32, #tpu.memory_space<vmem>>, vector<1x2x32xf32>
    %139 = vector.shape_cast %138 : vector<1x2x32xf32> to vector<2x32xf32>
    %140 = vector.shape_cast %137 : vector<2x32xf32> to vector<1x2x32xf32>
    tpu.vector_store %arg6[%c5, %c0_40, %c0_41], %140 {strides = array<i32>} : memref<8x2x32xf32, #tpu.memory_space<vmem>>, vector<1x2x32xf32>,
    %141 = vector.extract_strided_slice %5 {offsets = [12, 0], sizes = [2, 128], strides = [1, 1]} : vector<16x128xf32> to vector<2x128xf32>
    %cst_42 = arith.constant dense<0.000000e+00> : vector<2x128xf32>
    %142 = tpu.matmul %137, %6, %cst_42 {dimension_numbers = #tpu.dot_dimension_numbers<[1], [0], [0], [1], [0, 0, 1, 1], [], []>} : vector<2x32xf32>, vector<32x128xf32>, vector<2x128xf32> -> vector<2x128xf32>
    %143 = arith.addf %141, %142 : vector<2x128xf32>
    %cst_43 = arith.constant 0.000000e+00 : f32
    %144 = vector.broadcast %cst_43 : f32 to vector<2x128xf32>
    %145 = arith.subf %144, %143 : vector<2x128xf32>
    %146 = math.exp %145 : vector<2x128xf32>
    %cst_44 = arith.constant 1.000000e+00 : f32
    %147 = vector.broadcast %cst_44 : f32 to vector<2x128xf32>
    %148 = arith.addf %147, %146 : vector<2x128xf32>
    %149 = tpu.reciprocal %148 : vector<2x128xf32> -> vector<2x128xf32>
    %150 = math.tanh %143 : vector<2x128xf32>
    %151 = vector.extract_strided_slice %149 {offsets = [0, 0], sizes = [2, 32], strides = [1, 1]} : vector<2x128xf32> to vector<2x32xf32>
    %152 = vector.extract_strided_slice %149 {offsets = [0, 32], sizes = [2, 32], strides = [1, 1]} : vector<2x128xf32> to vector<2x32xf32>
    %153 = vector.extract_strided_slice %150 {offsets = [0, 64], sizes = [2, 32], strides = [1, 1]} : vector<2x128xf32> to vector<2x32xf32>
    %154 = vector.extract_strided_slice %149 {offsets = [0, 96], sizes = [2, 32], strides = [1, 1]} : vector<2x128xf32> to vector<2x32xf32>
    %155 = arith.mulf %152, %135 : vector<2x32xf32>
    %156 = arith.mulf %151, %153 : vector<2x32xf32>
    %157 = arith.addf %155, %156 : vector<2x32xf32>
    %158 = math.tanh %157 : vector<2x32xf32>
    %159 = arith.mulf %154, %158 : vector<2x32xf32>
    %c6 = arith.constant 6 : index
    %c0_45 = arith.constant 0 : index
    %c0_46 = arith.constant 0 : index
    %160 = vector.load %arg6[%c6, %c0_45, %c0_46] : memref<8x2x32xf32, #tpu.memory_space<vmem>>, vector<1x2x32xf32>
    %161 = vector.shape_cast %160 : vector<1x2x32xf32> to vector<2x32xf32>
    %162 = vector.shape_cast %159 : vector<2x32xf32> to vector<1x2x32xf32>
    tpu.vector_store %arg6[%c6, %c0_45, %c0_46], %162 {strides = array<i32>} : memref<8x2x32xf32, #tpu.memory_space<vmem>>, vector<1x2x32xf32>,
    %163 = vector.extract_strided_slice %5 {offsets = [14, 0], sizes = [2, 128], strides = [1, 1]} : vector<16x128xf32> to vector<2x128xf32>
    %cst_47 = arith.constant dense<0.000000e+00> : vector<2x128xf32>
    %164 = tpu.matmul %159, %6, %cst_47 {dimension_numbers = #tpu.dot_dimension_numbers<[1], [0], [0], [1], [0, 0, 1, 1], [], []>} : vector<2x32xf32>, vector<32x128xf32>, vector<2x128xf32> -> vector<2x128xf32>
    %165 = arith.addf %163, %164 : vector<2x128xf32>
    %cst_48 = arith.constant 0.000000e+00 : f32
    %166 = vector.broadcast %cst_48 : f32 to vector<2x128xf32>
    %167 = arith.subf %166, %165 : vector<2x128xf32>
    %168 = math.exp %167 : vector<2x128xf32>
    %cst_49 = arith.constant 1.000000e+00 : f32
    %169 = vector.broadcast %cst_49 : f32 to vector<2x128xf32>
    %170 = arith.addf %169, %168 : vector<2x128xf32>
    %171 = tpu.reciprocal %170 : vector<2x128xf32> -> vector<2x128xf32>
    %172 = math.tanh %165 : vector<2x128xf32>
    %173 = vector.extract_strided_slice %171 {offsets = [0, 0], sizes = [2, 32], strides = [1, 1]} : vector<2x128xf32> to vector<2x32xf32>
    %174 = vector.extract_strided_slice %171 {offsets = [0, 32], sizes = [2, 32], strides = [1, 1]} : vector<2x128xf32> to vector<2x32xf32>
    %175 = vector.extract_strided_slice %172 {offsets = [0, 64], sizes = [2, 32], strides = [1, 1]} : vector<2x128xf32> to vector<2x32xf32>
    %176 = vector.extract_strided_slice %171 {offsets = [0, 96], sizes = [2, 32], strides = [1, 1]} : vector<2x128xf32> to vector<2x32xf32>
    %177 = arith.mulf %174, %157 : vector<2x32xf32>
    %178 = arith.mulf %173, %175 : vector<2x32xf32>
    %179 = arith.addf %177, %178 : vector<2x32xf32>
    %180 = math.tanh %179 : vector<2x32xf32>
    %181 = arith.mulf %176, %180 : vector<2x32xf32>
    %c7 = arith.constant 7 : index
    %c0_50 = arith.constant 0 : index
    %c0_51 = arith.constant 0 : index
    %182 = vector.load %arg6[%c7, %c0_50, %c0_51] : memref<8x2x32xf32, #tpu.memory_space<vmem>>, vector<1x2x32xf32>
    %183 = vector.shape_cast %182 : vector<1x2x32xf32> to vector<2x32xf32>
    %184 = vector.shape_cast %181 : vector<2x32xf32> to vector<1x2x32xf32>
    tpu.vector_store %arg6[%c7, %c0_50, %c0_51], %184 {strides = array<i32>} : memref<8x2x32xf32, #tpu.memory_space<vmem>>, vector<1x2x32xf32>,
    %c0_52 = arith.constant 0 : index
    %c0_53 = arith.constant 0 : index
    %185 = vector.load %arg7[%c0_52, %c0_53] : memref<2x32xf32, #tpu.memory_space<vmem>>, vector<2x32xf32>
    tpu.vector_store %arg7[%c0_52, %c0_53], %181 {strides = array<i32>} : memref<2x32xf32, #tpu.memory_space<vmem>>, vector<2x32xf32>,
    %c0_54 = arith.constant 0 : index
    %c0_55 = arith.constant 0 : index
    %186 = vector.load %arg8[%c0_54, %c0_55] : memref<2x32xf32, #tpu.memory_space<vmem>>, vector<2x32xf32>
    tpu.vector_store %arg8[%c0_54, %c0_55], %179 {strides = array<i32>} : memref<2x32xf32, #tpu.memory_space<vmem>>, vector<2x32xf32>,
    return
  }
}

</mosaic_0001>

<bundles_post_ra>
// kernel: tpu_custom_call.1
= control target key start
LH: loop header
LB: loop body
LE: loop exit
PB: predicated region body
PF: predicated region fallthrough
CT: control target
= control target key end

     0   :  { %14 = vsyncpa [#allocation3], 0  ;;  %s1638_s0 = inlined_call_operand.vmem [shape: f32[16,4], index: 0, kind: input, shape index: {}]   ;;  %s1639_s1 = inlined_call_operand.vmem [shape: f32[4,128], index: 1, kind: input, shape index: {}]   ;;  %s1640_s2 = inlined_call_operand.hbm [shape: f32[32,128], index: 2, kind: input, shape index: {}]   ;;  %s1641_s3 = inlined_call_operand.vmem [shape: f32[1,128], index: 3, kind: input, shape index: {}]   ;;  %s1642_s4 = inlined_call_operand.vmem [shape: f32[2,32], index: 4, kind: input, shape index: {}]   ;;  %s1643_s5 = inlined_call_operand.vmem [shape: f32[2,32], index: 5, kind: input, shape index: {}]   ;;  %s1644_s6 = inlined_call_operand.hbm [shape: f32[8,2,32], index: 6, kind: output, shape index: {0}]   ;;  %s1645_s7 = inlined_call_operand.hbm [shape: f32[2,32], index: 7, kind: output, shape index: {1}]   ;;  %s1646_s8 = inlined_call_operand.hbm [shape: f32[2,32], index: 8, kind: output, shape index: {2}]  }
   0x1   :  { %15 = vsyncpa [#allocation4], 0 }
   0x2   :  { %16 = vsyncpa [#allocation7], 0  ;;  %s1383_s27 = smov [#allocation2]  }
   0x3   :  { %s26_s28 = sshll.u32 %s1383_s27, 4  ;;  %s27_s28 = int_to_ptr.vmem [resolvable:$true] %s26_s28 }
   0x4   :  { %s1305_s29 = scalar_lea.vmem %s27_s28, 512  ;;  %p1310_p1 = scmp.lt.s32.totalorder %s27_s28, %s27_s28 }
   0x5   :  { %p1306_p0 = scmp.ne.s32.totalorder %s27_s28, %s1305_s29  ;;  %p1311_p2 = scmp.lt.s32.totalorder %s1305_s29, %s1305_s29 }
   0x7   :  { %p1312_p3 = por %p1311_p2, %p1310_p1 }
   0x9   :  { %p1313_p4 = pnand %p1312_p3, %p1306_p0 }
   0xb   :  { %1316 = shalt.err (!%p1313_p4)
}
   0xc   :  { %s1384_s30 = smov 128   ;;  %s1385_s9 = smov 8  }
   0xd   :  { %32 = dma.hbm_to_vmem [thread:$0]  %s1640_s2, 512, %s27_s28, [#allocation3], %s1384_s30, %s1384_s30, %s1385_s9  }
   0xe   :  { %1377 = dma.done.wait [#allocation3], 512  }
   0xf   :  { %1378 = vsyncadd [#allocation3], 4294966784  ;;  %v1386_v0 = vmov 0.0   ;;  %vm1387_vm0 = vmmov 0   ;;  %vm59_vm1 = vcmask 1043456   ;;  %vm52_vm2 = vcmask 31744  }
  0x10   :  { %1133 = vmatprep.subr.mxu1 %v1386_v0  ;;  %1141 = vmatprep.mubr.msk.f32.mxu1 %vm1387_vm0, %v1386_v0  ;;  %v44_v1 = vld [vmem:[%s1639_s1] sm:$0xf]  ;;  %v1449_v2 = vld [vmem:[#allocation2 + $0x18] sm:$0xff]  ;;  %v43_v4 = vld [vmem:[%s1638_s0 + $0x8] sm:$0xff]  ;;  %vm144_vm3 = vcmask 261120   ;;  %s1388_s18 = smov 64  }
  0x11   :  { %v42_v3 = vld [vmem:[%s1638_s0] sm:$0xff]  ;;  %1128 = vmatprep.subr.msk.mxu0 %vm59_vm1, %v44_v1  ;;  %1134 = vmatpush3.msra.mxu1 %v1449_v2  ;;  %v1458_v5 = vld [vmem:[#allocation2 + $0x10] sm:$0xff]  ;;  %v1461_v6 = vld [vmem:[#allocation2 + $0x8] sm:$0xff]  ;;  %vm250_vm4 = vcmask 254976   ;;  %vm471_vm5 = vcmask 259076   ;;  %vm359_vm6 = vcmask 257026  }
  0x12   :  { %1129 = vmatpush3.msk.msra.mxu0 %vm59_vm1, %v44_v1  ;;  %1130 = vmatprep.mubr.msk.f32.mxu0 %vm52_vm2, %v42_v3  ;;  %v1466_v7 = vld [vmem:[#allocation2] sm:$0xff]  ;;  %vm583_vm7 = vcmask 261126   ;;  %s1391_s21 = smov [#allocation6]   ;;  %s1392_s23 = smov [#allocation5]  }
  0x13   :  { %1135 = vmatprep.subr.mxu1 %v1386_v0  ;;  %1131 = vmatmul.mubr.msk.f32.vlgmr.msra.gmra.mxu0 %vm52_vm2, %v43_v4  ;;  %v142_v8 = vld [vmem:[%s1642_s4] sm:$0x3]  ;;  %s1047_s22 = sshll.u32 %s1391_s21, 4  ;;  %s1034_s24 = sshll.u32 %s1392_s23, 4  ;;  %s1048_s22 = int_to_ptr.vmem [resolvable:$true] %s1047_s22  ;;  %s1035_s24 = int_to_ptr.vmem [resolvable:$true] %s1034_s24 }
  0x14   :  { %1136 = vmatpush3.msra.mxu1 %v1458_v5  ;;  %1144 = vmatprep.subr.mxu0 %v1386_v0  ;;  %v1073_v9 = vld [vmem:[%s1641_s3] ss:$0 sm:$0xff]  ;;  %s1389_s3 = smov 32   ;;  %s1393_s25 = smov [#allocation8]  }
  0x15   :  { %1137 = vmatprep.subr.mxu1 %v1386_v0  ;;  %1145 = vmatpush3.msra.mxu0 %v1449_v2  ;;  %v143_v18 = vld [vmem:[%s1643_s5] sm:$0x3]  ;;  %s1390_s5 = smov 96   ;;  %s1057_s26 = sshll.u32 %s1393_s25, 4  ;;  %s1058_s26 = int_to_ptr.vmem [resolvable:$true] %s1057_s26 }
  0x16   :  { %1138 = vmatpush3.msra.mxu1 %v1461_v6  ;;  %1146 = vmatprep.subr.mxu0 %v1386_v0  ;;  %s1317_s27 = scalar_lea.vmem %s1048_s22, 32  ;;  %p1322_p6 = scmp.lt.s32.totalorder %s1048_s22, %s1048_s22 }
  0x17   :  { %1139 = vmatprep.subr.mxu1 %v1386_v0  ;;  %1147 = vmatpush3.msra.mxu0 %v1458_v5  ;;  %p1318_p5 = scmp.ne.s32.totalorder %s1048_s22, %s1317_s27  ;;  %p1323_p7 = scmp.lt.s32.totalorder %s1317_s27, %s1317_s27 }
  0x18   :  { %1140 = vmatpush3.msra.mxu1 %v1466_v7  ;;  %1148 = vmatprep.subr.mxu0 %v1386_v0 }
  0x19   :  { %1142 = vmatmul.mubr.msk.f32.vlgmr.msra.gmra.mxu1 %vm144_vm3, %v142_v8  ;;  %1149 = vmatpush3.msra.mxu0 %v1461_v6  ;;  %p1324_p8 = por %p1323_p7, %p1322_p6 }
  0x1a   :  { %1150 = vmatprep.subr.mxu0 %v1386_v0  ;;  %1152 = vmatprep.mubr.msk.f32.mxu0 %vm1387_vm0, %v1386_v0 }
  0x1b   :  { %1151 = vmatpush3.msra.mxu0 %v1466_v7  ;;  %1155 = vmatprep.subr.mxu1 %v1386_v0  ;;  %p1325_p9 = pnand %p1324_p8, %p1318_p5 }
  0x1c   :  { %1156 = vmatpush3.msra.mxu1 %v1449_v2  ;;  %1163 = vmatprep.mubr.msk.f32.mxu1 %vm1387_vm0, %v1386_v0 }
  0x1d   :  { %1157 = vmatprep.subr.mxu1 %v1386_v0  ;;  %1166 = vmatprep.subr.mxu0 %v1386_v0 }
  0x1e   :  { %1158 = vmatpush3.msra.mxu1 %v1458_v5 }
  0x1f   :  { %1159 = vmatprep.subr.mxu1 %v1386_v0 }
  0x20   :  { %1160 = vmatpush3.msra.mxu1 %v1461_v6 }
  0x21   :  { %1161 = vmatprep.subr.mxu1 %v1386_v0 }
  0x22   :  { %1162 = vmatpush3.msra.mxu1 %v1466_v7 }
  0x23   :  { %1177 = vmatprep.subr.mxu1 %v1386_v0 }
  0xd3   :  { %v1132_v10 = vpop.f32.mrf.mxu0 }
  0xd4   :  { %v1499_v11 = vadd.f32 %v1132_v10, %v1073_v9 }
  0xd5   :  { %v129_v12 = vpop.f32.mrf.mxu0 }
  0xd6   :  { %v1501_v13 = vadd.f32 %v1073_v9, %v129_v12 }
  0xd9   :  { %v214_v14 = vpop.f32.mrf.mxu1 }
  0xda   :  { %v218_v15 = vadd.f32 %v214_v14, %v1501_v13 }
  0xdb   :  { %v1143_v16 = vpop.f32.mrf.mxu1 }
  0xdc   :  { %1233 = vtanh.f32 %v218_v15  ;;  %v219_v19 = vsub.f32 0.0, %v218_v15 }
  0xde   :  { %v220_v20 = vmul.f32 1.442695, %v219_v19 }
  0xe0   :  { %1235 = vpow2.f32 %v220_v20 }
  0xe9   :  { %v1234_v17 = vpop.eup %1233 }
  0xea   :  { %231 = vrot.lane.b32.xlu0 %v1234_v17, %s1388_s18 }
  0xed   :  { %v1236_v21 = vpop.eup %1235 }
  0xee   :  { %226 = vrot.lane.b32.xlu0 %v143_v18, %s1389_s3  ;;  %v222_v22 = vadd.f32 1.0, %v1236_v21 }
  0xf0   :  { %1237 = vrcp.f32 %v222_v22 }
  0xfd   :  { %v1238_v23 = vpop.eup %1237 }
 0x15c   :  { %v232_v24 = vpop.permute.xlu0 %231 }
 0x15d   :  { %v234_v25 = vmul.f32 %v1238_v23, %v232_v24 }
 0x15f   :  { %236 = vrot.lane.b32.xlu1 %v234_v25, %s1389_s3 }
 0x160   :  { %v227_v26 = vpop.permute.xlu0 %226 }
 0x161   :  { %v229_v27 = vmul.f32 %v1238_v23, %v227_v26 }
 0x1d1   :  { %v237_v28 = vpop.permute.xlu1 %236 }
 0x1d2   :  { %v239_v29 = vadd.f32 %v237_v28, %v229_v27 }
 0x1d4   :  { %1239 = vtanh.f32 %v239_v29  ;;  %v335_v46 = vrot.slane %v239_v29, 6 }
 0x1e1   :  { %v1240_v30 = vpop.eup %1239 }
 0x1e2   :  { %242 = vrot.lane.b32.xlu1 %v1240_v30, %s1388_s18 }
 0x254   :  { %v243_v31 = vpop.permute.xlu1 %242 }
 0x255   :  { %v245_v32 = vmul.f32 %v1238_v23, %v243_v31 }
 0x257   :  { %247 = vrot.lane.b32.xlu0 %v245_v32, %s1389_s3 }
 0x2c9   :  { %v248_v33 = vpop.permute.xlu0 %247 }
 0x2ca   :  { %251 = vst.msk [vmem:[#allocation5] sm:$0x3] %vm250_vm4, %v248_v33  ;;  %1153 = vmatmul.mubr.msk.f32.vlgmr.msra.gmra.mxu0 %vm144_vm3, %v248_v33 }
 0x2cb   :  { %1167 = vmatpush3.msra.mxu0 %v1449_v2  ;;  %1174 = vmatprep.mubr.msk.f32.mxu0 %vm1387_vm0, %v1386_v0 }
 0x2cc   :  { %1168 = vmatprep.subr.mxu0 %v1386_v0 }
 0x2cd   :  { %1169 = vmatpush3.msra.mxu0 %v1458_v5 }
 0x2ce   :  { %1170 = vmatprep.subr.mxu0 %v1386_v0 }
 0x2cf   :  { %1171 = vmatpush3.msra.mxu0 %v1461_v6 }
 0x2d0   :  { %1172 = vmatprep.subr.mxu0 %v1386_v0 }
 0x2d1   :  { %1173 = vmatpush3.msra.mxu0 %v1466_v7 }
 0x2d2   :  { %1188 = vmatprep.subr.mxu0 %v1386_v0 }
 0x38a   :  { %v320_v34 = vpop.f32.mrf.mxu0 }
 0x38b   :  { %v325_v35 = vrot.slane %v320_v34, 6 }
 0x38c   :  { %v1154_v36 = vpop.f32.mrf.mxu0 }
 0x38d   :  { %v327_v37 = vadd.f32 %v325_v35, %v1501_v13 }
 0x38f   :  { %1241 = vtanh.f32 %v327_v37  ;;  %v328_v39 = vsub.f32 0.0, %v327_v37 }
 0x391   :  { %v329_v40 = vmul.f32 1.442695, %v328_v39 }
 0x393   :  { %1243 = vpow2.f32 %v329_v40 }
 0x39c   :  { %v1242_v38 = vpop.eup %1241 }
 0x39d   :  { %339 = vrot.lane.b32.xlu1 %v1242_v38, %s1388_s18 }
 0x3a0   :  { %v1244_v41 = vpop.eup %1243 }
 0x3a1   :  { %v331_v42 = vadd.f32 1.0, %v1244_v41 }
 0x3a3   :  { %1245 = vrcp.f32 %v331_v42 }
 0x3b0   :  { %v1246_v43 = vpop.eup %1245 }
 0x3b1   :  { %v337_v47 = vmul.f32 %v1246_v43, %v335_v46 }
 0x40f   :  { %v340_v44 = vpop.permute.xlu1 %339 }
 0x410   :  { %v342_v45 = vmul.f32 %v1246_v43, %v340_v44 }
 0x412   :  { %344 = vrot.lane.b32.xlu0 %v342_v45, %s1389_s3 }
 0x484   :  { %v345_v48 = vpop.permute.xlu0 %344 }
 0x485   :  { %v347_v49 = vadd.f32 %v345_v48, %v337_v47 }
 0x487   :  { %1247 = vtanh.f32 %v347_v49  ;;  %v447_v8 = vrot.slane %v347_v49, 6 }
 0x494   :  { %v1248_v50 = vpop.eup %1247 }
 0x495   :  { %350 = vrot.lane.b32.xlu1 %v1248_v50, %s1388_s18 }
 0x507   :  { %v351_v51 = vpop.permute.xlu1 %350 }
 0x508   :  { %v1528_v52 = vmul.f32 %v1246_v43, %v351_v51 }
 0x50a   :  { %v361_v53 = vrot.slane %v1528_v52, 2 }
 0x50c   :  { %362 = vrot.lane.b32.xlu0 %v361_v53, %s1389_s3 }
 0x57e   :  { %v363_v54 = vpop.permute.xlu0 %362 }
 0x57f   :  { %1164 = vmatmul.mubr.msk.f32.vlgmr.msra.gmra.mxu1 %vm144_vm3, %v363_v54 }
 0x580   :  { %1178 = vmatpush3.msra.mxu1 %v1449_v2  ;;  %1185 = vmatprep.mubr.msk.f32.mxu1 %vm1387_vm0, %v1386_v0 }
 0x581   :  { %1179 = vmatprep.subr.mxu1 %v1386_v0 }
 0x582   :  { %1180 = vmatpush3.msra.mxu1 %v1458_v5 }
 0x583   :  { %1181 = vmatprep.subr.mxu1 %v1386_v0 }
 0x584   :  { %1182 = vmatpush3.msra.mxu1 %v1461_v6 }
 0x585   :  { %1183 = vmatprep.subr.mxu1 %v1386_v0 }
 0x586   :  { %1184 = vmatpush3.msra.mxu1 %v1466_v7 }
 0x587   :  { %1199 = vmatprep.subr.mxu1 %v1386_v0 }
 0x63f   :  { %v432_v55 = vpop.f32.mrf.mxu1 }
 0x640   :  { %v437_v56 = vrot.slane %v432_v55, 4 }
 0x641   :  { %v1165_v57 = vpop.f32.mrf.mxu1 }
 0x642   :  { %v439_v58 = vadd.f32 %v437_v56, %v1501_v13 }
 0x644   :  { %1249 = vtanh.f32 %v439_v58  ;;  %v440_v60 = vsub.f32 0.0, %v439_v58 }
 0x646   :  { %v441_v61 = vmul.f32 1.442695, %v440_v60 }
 0x648   :  { %1251 = vpow2.f32 %v441_v61 }
 0x651   :  { %v1250_v59 = vpop.eup %1249 }
 0x652   :  { %451 = vrot.lane.b32.xlu1 %v1250_v59, %s1388_s18 }
 0x655   :  { %v1252_v62 = vpop.eup %1251 }
 0x656   :  { %v443_v63 = vadd.f32 1.0, %v1252_v62 }
 0x658   :  { %1253 = vrcp.f32 %v443_v63 }
 0x665   :  { %v1254_v1 = vpop.eup %1253 }
 0x666   :  { %v449_v9 = vmul.f32 %v1254_v1, %v447_v8 }
 0x6c4   :  { %v452_v3 = vpop.permute.xlu1 %451 }
 0x6c5   :  { %v454_v4 = vmul.f32 %v1254_v1, %v452_v3 }
 0x6c7   :  { %456 = vrot.lane.b32.xlu0 %v454_v4, %s1389_s3 }
 0x739   :  { %v457_v10 = vpop.permute.xlu0 %456 }
 0x73a   :  { %v459_v12 = vadd.f32 %v457_v10, %v449_v9 }
 0x73c   :  { %1255 = vtanh.f32 %v459_v12  ;;  %v559_v31 = vrot.slane %v459_v12, 6 }
 0x749   :  { %v1256_v14 = vpop.eup %1255 }
 0x74a   :  { %462 = vrot.lane.b32.xlu1 %v1256_v14, %s1388_s18 }
 0x7bc   :  { %v463_v15 = vpop.permute.xlu1 %462 }
 0x7bd   :  { %v1547_v16 = vmul.f32 %v1254_v1, %v463_v15 }
 0x7bf   :  { %v473_v17 = vrot.slane %v1547_v16, 4 }
 0x7c1   :  { %474 = vrot.lane.b32.xlu0 %v473_v17, %s1389_s3 }
 0x833   :  { %v475_v18 = vpop.permute.xlu0 %474 }
 0x834   :  { %1175 = vmatmul.mubr.msk.f32.vlgmr.msra.gmra.mxu0 %vm144_vm3, %v475_v18 }
 0x835   :  { %1189 = vmatpush3.msra.mxu0 %v1449_v2  ;;  %1196 = vmatprep.mubr.msk.f32.mxu0 %vm1387_vm0, %v1386_v0 }
 0x836   :  { %1190 = vmatprep.subr.mxu0 %v1386_v0 }
 0x837   :  { %1191 = vmatpush3.msra.mxu0 %v1458_v5 }
 0x838   :  { %1192 = vmatprep.subr.mxu0 %v1386_v0 }
 0x839   :  { %1193 = vmatpush3.msra.mxu0 %v1461_v6 }
 0x83a   :  { %1194 = vmatprep.subr.mxu0 %v1386_v0 }
 0x83b   :  { %1195 = vmatpush3.msra.mxu0 %v1466_v7 }
 0x83c   :  { %1210 = vmatprep.subr.mxu0 %v1386_v0 }
 0x8f4   :  { %v544_v19 = vpop.f32.mrf.mxu0 }
 0x8f5   :  { %v549_v20 = vrot.slane %v544_v19, 2 }
 0x8f6   :  { %v1176_v21 = vpop.f32.mrf.mxu0 }
 0x8f7   :  { %v551_v22 = vadd.f32 %v549_v20, %v1501_v13 }
 0x8f9   :  { %1257 = vtanh.f32 %v551_v22  ;;  %v552_v24 = vsub.f32 0.0, %v551_v22 }
 0x8fb   :  { %v553_v25 = vmul.f32 1.442695, %v552_v24 }
 0x8fd   :  { %1259 = vpow2.f32 %v553_v25 }
 0x906   :  { %v1258_v23 = vpop.eup %1257 }
 0x907   :  { %563 = vrot.lane.b32.xlu1 %v1258_v23, %s1388_s18 }
 0x90a   :  { %v1260_v26 = vpop.eup %1259 }
 0x90b   :  { %v555_v27 = vadd.f32 1.0, %v1260_v26 }
 0x90d   :  { %1261 = vrcp.f32 %v555_v27 }
 0x91a   :  { %v1262_v28 = vpop.eup %1261 }
 0x91b   :  { %v561_v32 = vmul.f32 %v1262_v28, %v559_v31 }
 0x979   :  { %v564_v29 = vpop.permute.xlu1 %563 }
 0x97a   :  { %v566_v30 = vmul.f32 %v1262_v28, %v564_v29 }
 0x97c   :  { %568 = vrot.lane.b32.xlu0 %v566_v30, %s1389_s3 }
 0x9ee   :  { %v569_v33 = vpop.permute.xlu0 %568 }
 0x9ef   :  { %v571_v34 = vadd.f32 %v569_v33, %v561_v32 }
 0x9f1   :  { %1263 = vtanh.f32 %v571_v34  ;;  %v668_v50 = vrot.slane %v571_v34, 6 }
 0x9fe   :  { %v1264_v13 = vpop.eup %1263 }
 0x9ff   :  { %574 = vrot.lane.b32.xlu1 %v1264_v13, %s1388_s18 }
 0xa71   :  { %v575_v35 = vpop.permute.xlu1 %574 }
 0xa72   :  { %v1566_v36 = vmul.f32 %v1262_v28, %v575_v35 }
 0xa74   :  { %v585_v37 = vrot.slane %v1566_v36, 6 }
 0xa76   :  { %586 = vrot.lane.b32.xlu0 %v585_v37, %s1389_s3 }
 0xae8   :  { %v587_v38 = vpop.permute.xlu0 %586 }
 0xae9   :  { %1186 = vmatmul.mubr.msk.f32.vlgmr.msra.gmra.mxu1 %vm144_vm3, %v587_v38 }
 0xaea   :  { %1200 = vmatpush3.msra.mxu1 %v1449_v2  ;;  %1207 = vmatprep.mubr.msk.f32.mxu1 %vm1387_vm0, %v1386_v0 }
 0xaeb   :  { %1201 = vmatprep.subr.mxu1 %v1386_v0 }
 0xaec   :  { %1202 = vmatpush3.msra.mxu1 %v1458_v5 }
 0xaed   :  { %1203 = vmatprep.subr.mxu1 %v1386_v0 }
 0xaee   :  { %1204 = vmatpush3.msra.mxu1 %v1461_v6 }
 0xaef   :  { %1205 = vmatprep.subr.mxu1 %v1386_v0 }
 0xaf0   :  { %1206 = vmatpush3.msra.mxu1 %v1466_v7 }
 0xba9   :  { %v656_v39 = vpop.f32.mrf.mxu1 }
 0xbaa   :  { %v660_v40 = vadd.f32 %v656_v39, %v1499_v11 }
 0xbab   :  { %v1187_v41 = vpop.f32.mrf.mxu1 }
 0xbac   :  { %1265 = vtanh.f32 %v660_v40  ;;  %v661_v43 = vsub.f32 0.0, %v660_v40 }
 0xbae   :  { %v662_v44 = vmul.f32 1.442695, %v661_v43 }
 0xbb0   :  { %1267 = vpow2.f32 %v662_v44 }
 0xbb9   :  { %v1266_v42 = vpop.eup %1265 }
 0xbba   :  { %672 = vrot.lane.b32.xlu1 %v1266_v42, %s1388_s18 }
 0xbbd   :  { %v1268_v45 = vpop.eup %1267 }
 0xbbe   :  { %v664_v46 = vadd.f32 1.0, %v1268_v45 }
 0xbc0   :  { %1269 = vrcp.f32 %v664_v46 }
 0xbcd   :  { %v1270_v47 = vpop.eup %1269 }
 0xbce   :  { %v670_v51 = vmul.f32 %v1270_v47, %v668_v50 }
 0xc2c   :  { %v673_v48 = vpop.permute.xlu1 %672 }
 0xc2d   :  { %v675_v49 = vmul.f32 %v1270_v47, %v673_v48 }
 0xc2f   :  { %677 = vrot.lane.b32.xlu0 %v675_v49, %s1389_s3 }
 0xca1   :  { %v678_v53 = vpop.permute.xlu0 %677 }
 0xca2   :  { %v680_v54 = vadd.f32 %v678_v53, %v670_v51 }
 0xca4   :  { %1271 = vtanh.f32 %v680_v54 }
 0xcb1   :  { %v1272_v55 = vpop.eup %1271 }
 0xcb2   :  { %683 = vrot.lane.b32.xlu1 %v1272_v55, %s1388_s18 }
 0xd24   :  { %v684_v56 = vpop.permute.xlu1 %683 }
 0xd25   :  { %v686_v57 = vmul.f32 %v1270_v47, %v684_v56 }
 0xd27   :  { %688 = vrot.lane.b32.xlu0 %v686_v57, %s1389_s3 }
 0xd99   :  { %v689_v58 = vpop.permute.xlu0 %688 }
 0xd9a   :  { %692 = vst.msk [vmem:[#allocation5 + $0x8] sm:$0x3] %vm250_vm4, %v689_v58  ;;  %1197 = vmatmul.mubr.msk.f32.vlgmr.msra.gmra.mxu0 %vm144_vm3, %v689_v58 }
 0xd9b   :  { %1211 = vmatpush3.msra.mxu0 %v1449_v2  ;;  %1218 = vmatprep.mubr.msk.f32.mxu0 %vm1387_vm0, %v1386_v0 }
 0xd9c   :  { %1212 = vmatprep.subr.mxu0 %v1386_v0 }
 0xd9d   :  { %1213 = vmatpush3.msra.mxu0 %v1458_v5 }
 0xd9e   :  { %1214 = vmatprep.subr.mxu0 %v1386_v0 }
 0xd9f   :  { %1215 = vmatpush3.msra.mxu0 %v1461_v6 }
 0xda0   :  { %1216 = vmatprep.subr.mxu0 %v1386_v0 }
 0xda1   :  { %1217 = vmatpush3.msra.mxu0 %v1466_v7  ;;  %v776_v7 = vrot.slane %v680_v54, 6 }
 0xe5a   :  { %v761_v59 = vpop.f32.mrf.mxu0 }
 0xe5b   :  { %v766_v60 = vrot.slane %v761_v59, 6 }
 0xe5c   :  { %v1198_v61 = vpop.f32.mrf.mxu0 }
 0xe5d   :  { %v768_v2 = vadd.f32 %v766_v60, %v1499_v11 }
 0xe5f   :  { %1273 = vtanh.f32 %v768_v2  ;;  %v769_v63 = vsub.f32 0.0, %v768_v2 }
 0xe61   :  { %v770_v1 = vmul.f32 1.442695, %v769_v63 }
 0xe63   :  { %1275 = vpow2.f32 %v770_v1 }
 0xe6c   :  { %v1274_v62 = vpop.eup %1273 }
 0xe6d   :  { %780 = vrot.lane.b32.xlu1 %v1274_v62, %s1388_s18 }
 0xe70   :  { %v1276_v5 = vpop.eup %1275 }
 0xe71   :  { %v772_v3 = vadd.f32 1.0, %v1276_v5 }
 0xe73   :  { %1277 = vrcp.f32 %v772_v3 }
 0xe80   :  { %v1278_v6 = vpop.eup %1277 }
 0xe81   :  { %v778_v8 = vmul.f32 %v1278_v6, %v776_v7 }
 0xedf   :  { %v781_v4 = vpop.permute.xlu1 %780 }
 0xee0   :  { %v783_v0 = vmul.f32 %v1278_v6, %v781_v4 }
 0xee2   :  { %785 = vrot.lane.b32.xlu0 %v783_v0, %s1389_s3 }
 0xf54   :  { %v786_v9 = vpop.permute.xlu0 %785 }
 0xf55   :  { %v788_v10 = vadd.f32 %v786_v9, %v778_v8 }
 0xf57   :  { %1279 = vtanh.f32 %v788_v10  ;;  %v887_v31 = vrot.slane %v788_v10, 6 }
 0xf64   :  { %v1280_v12 = vpop.eup %1279 }
 0xf65   :  { %791 = vrot.lane.b32.xlu1 %v1280_v12, %s1388_s18 }
 0xfd7   :  { %v792_v14 = vpop.permute.xlu1 %791 }
 0xfd8   :  { %v794_v15 = vmul.f32 %v1278_v6, %v792_v14 }
 0xfda   :  { %v801_v17 = vrot.slane %v794_v15, 2 }
 0xfdc   :  { %802 = vrot.lane.b32.xlu0 %v801_v17, %s1389_s3 }
0x104e   :  { %v803_v18 = vpop.permute.xlu0 %802 }
0x104f   :  { %1208 = vmatmul.mubr.msk.f32.vlgmr.msra.gmra.mxu1 %vm144_vm3, %v803_v18 }
0x110f   :  { %v872_v19 = vpop.f32.mrf.mxu1 }
0x1110   :  { %v877_v20 = vrot.slane %v872_v19, 4 }
0x1111   :  { %v1209_v21 = vpop.f32.mrf.mxu1 }
0x1112   :  { %v879_v22 = vadd.f32 %v877_v20, %v1499_v11 }
0x1114   :  { %1281 = vtanh.f32 %v879_v22  ;;  %v880_v24 = vsub.f32 0.0, %v879_v22 }
0x1116   :  { %v881_v25 = vmul.f32 1.442695, %v880_v24 }
0x1118   :  { %1283 = vpow2.f32 %v881_v25 }
0x1121   :  { %v1282_v23 = vpop.eup %1281 }
0x1122   :  { %891 = vrot.lane.b32.xlu1 %v1282_v23, %s1388_s18 }
0x1125   :  { %v1284_v26 = vpop.eup %1283 }
0x1126   :  { %v883_v27 = vadd.f32 1.0, %v1284_v26 }
0x1128   :  { %1285 = vrcp.f32 %v883_v27 }
0x1135   :  { %v1286_v28 = vpop.eup %1285 }
0x1136   :  { %v889_v32 = vmul.f32 %v1286_v28, %v887_v31 }
0x1194   :  { %v892_v29 = vpop.permute.xlu1 %891 }
0x1195   :  { %v894_v30 = vmul.f32 %v1286_v28, %v892_v29 }
0x1197   :  { %896 = vrot.lane.b32.xlu0 %v894_v30, %s1389_s3 }
0x1209   :  { %v897_v33 = vpop.permute.xlu0 %896 }
0x120a   :  { %v899_v34 = vadd.f32 %v897_v33, %v889_v32 }
0x120c   :  { %1287 = vtanh.f32 %v899_v34 }
0x1219   :  { %v1288_v13 = vpop.eup %1287 }
0x121a   :  { %902 = vrot.lane.b32.xlu1 %v1288_v13, %s1388_s18 }
0x128c   :  { %v903_v35 = vpop.permute.xlu1 %902 }
0x128d   :  { %v905_v37 = vmul.f32 %v1286_v28, %v903_v35 }
0x128f   :  { %v912_v38 = vrot.slane %v905_v37, 4 }
0x1291   :  { %913 = vrot.lane.b32.xlu0 %v912_v38, %s1389_s3 }
0x1303   :  { %v914_v39 = vpop.permute.xlu0 %913 }
0x1304   :  { %1219 = vmatmul.mubr.msk.f32.vlgmr.msra.gmra.mxu0 %vm144_vm3, %v914_v39 }
0x13c4   :  { %v983_v40 = vpop.f32.mrf.mxu0 }
0x13c5   :  { %v988_v41 = vrot.slane %v983_v40, 2 }
0x13c6   :  { %v1220_v42 = vpop.f32.mrf.mxu0 }
0x13c7   :  { %v990_v43 = vadd.f32 %v988_v41, %v1499_v11  ;;  %v998_v11 = vrot.slane %v899_v34, 6 }
0x13c9   :  { %1289 = vtanh.f32 %v990_v43  ;;  %v991_v45 = vsub.f32 0.0, %v990_v43 }
0x13cb   :  { %v992_v46 = vmul.f32 1.442695, %v991_v45 }
0x13cd   :  { %1291 = vpow2.f32 %v992_v46 }
0x13d6   :  { %v1290_v44 = vpop.eup %1289 }
0x13d7   :  { %1002 = vrot.lane.b32.xlu1 %v1290_v44, %s1388_s18 }
0x13da   :  { %v1292_v47 = vpop.eup %1291 }
0x13db   :  { %v994_v48 = vadd.f32 1.0, %v1292_v47 }
0x13dd   :  { %1293 = vrcp.f32 %v994_v48 }
0x13ea   :  { %v1294_v49 = vpop.eup %1293 }
0x13eb   :  { %v1000_v53 = vmul.f32 %v1294_v49, %v998_v11 }
0x1449   :  { %v1003_v50 = vpop.permute.xlu1 %1002 }
0x144a   :  { %v1005_v51 = vmul.f32 %v1294_v49, %v1003_v50 }
0x144c   :  { %1007 = vrot.lane.b32.xlu0 %v1005_v51, %s1389_s3 }
0x1450   :  { %467 = vrot.lane.b32.xlu0 %v1547_v16, %s1389_s3 }
0x1454   :  { %796 = vrot.lane.b32.xlu0 %v794_v15, %s1389_s3 }
0x14be   :  { %v1008_v54 = vpop.permute.xlu0 %1007 }
0x14bf   :  { %v1010_v55 = vadd.f32 %v1008_v54, %v1000_v53 }
0x14c1   :  { %1295 = vtanh.f32 %v1010_v55 }
0x14c2   :  { %v468_v56 = vpop.permute.xlu0 %467 }
0x14c3   :  { %472 = vst.msk [vmem:[#allocation5] sm:$0x30] %vm471_vm5, %v468_v56 }
0x14c6   :  { %v797_v57 = vpop.permute.xlu0 %796 }
0x14c7   :  { %800 = vst.msk [vmem:[#allocation5 + $0x8] sm:$0xc] %vm359_vm6, %v797_v57 }
0x14ce   :  { %v1296_v58 = vpop.eup %1295 }
0x14cf   :  { %1013 = vrot.lane.b32.xlu1 %v1296_v58, %s1388_s18 }
0x14d3   :  { %355 = vrot.lane.b32.xlu1 %v1528_v52, %s1389_s3 }
0x14d7   :  { %579 = vrot.lane.b32.xlu1 %v1566_v36, %s1389_s3 }
0x14db   :  { %907 = vrot.lane.b32.xlu1 %v905_v37, %s1389_s3 }
0x1541   :  { %v1014_v16 = vpop.permute.xlu1 %1013 }
0x1542   :  { %v1016_v59 = vmul.f32 %v1294_v49, %v1014_v16 }
0x1544   :  { %1018 = vrot.lane.b32.xlu0 %v1016_v59, %s1389_s3 }
0x1545   :  { %v356_v60 = vpop.permute.xlu1 %355 }
0x1546   :  { %360 = vst.msk [vmem:[#allocation5] sm:$0xc] %vm359_vm6, %v356_v60 }
0x1548   :  { %1025 = vrot.lane.b32.xlu0 %v1010_v55, %s1390_s5 }
0x1549   :  { %v580_v61 = vpop.permute.xlu1 %579 }
0x154a   :  { %584 = vst.msk [vmem:[#allocation5] sm:$0xc0] %vm583_vm7, %v580_v61 }
0x154d   :  { %v908_v2 = vpop.permute.xlu1 %907 }
0x154e   :  { %911 = vst.msk [vmem:[#allocation5 + $0x8] sm:$0x30] %vm471_vm5, %v908_v2 }
0x15b6   :  { %v1019_v52 = vpop.permute.xlu0 %1018 }
0x15b7   :  { %1022 = vst.msk [vmem:[#allocation5 + $0x8] sm:$0xc0] %vm583_vm7, %v1019_v52  ;;  %1023 = vst.msk [vmem:[#allocation6 - $0x6] sm:$0xc0] %vm583_vm7, %v1019_v52 }
0x15b8   :  { %1328 = shalt.err (!%p1325_p9)
}
0x15b9   :  { %1050 = dma.vmem_to_hbm [thread:$0]  %s1048_s22, 32, %s1645_s7, [#allocation7]  }
0x15ba   :  { %s1337_s30 = scalar_lea.vmem %s1035_s24, 256  ;;  %p1342_p11 = scmp.lt.s32.totalorder %s1035_s24, %s1035_s24 }
0x15bb   :  { %p1338_p10 = scmp.ne.s32.totalorder %s1035_s24, %s1337_s30  ;;  %p1343_p12 = scmp.lt.s32.totalorder %s1337_s30, %s1337_s30 }
0x15bd   :  { %p1344_p13 = por %p1343_p12, %p1342_p11 }
0x15bf   :  { %p1345_p0 = pnand %p1344_p13, %p1338_p10 }
0x15c1   :  { %1348 = shalt.err (!%p1345_p0)
}
0x15c2   :  { %s1394_s9 = smov 2   ;;  %v1026_v36 = vpop.permute.xlu0 %1025  ;;  %s1357_s12 = scalar_lea.vmem %s1058_s26, 32 }
0x15c3   :  { %1040 = dma.vmem_to_hbm [thread:$0]  %s1035_s24, 256, %s1644_s6, [#allocation4], %s1389_s3, %s1389_s3, %s1394_s9   ;;  %1028 = vst.msk [vmem:[#allocation8 - $0x6] sm:$0xc0] %vm583_vm7, %v1026_v36 }
0x15c4   :  { %p1358_p1 = scmp.ne.s32.totalorder %s1058_s26, %s1357_s12  ;;  %p1362_p2 = scmp.lt.s32.totalorder %s1058_s26, %s1058_s26 }
0x15c5   :  { %p1363_p3 = scmp.lt.s32.totalorder %s1357_s12, %s1357_s12 }
0x15c7   :  { %p1364_p4 = por %p1363_p3, %p1362_p2 }
0x15c9   :  { %p1365_p5 = pnand %p1364_p4, %p1358_p1 }
0x15cb   :  { %1368 = shalt.err (!%p1365_p5)
}
0x15cc   :  { %1060 = dma.vmem_to_hbm [thread:$0]  %s1058_s26, 32, %s1646_s8, [#allocation7]  }
0x15cd   :  { %1379 = dma.done.wait [#allocation4], 256  }
0x15ce   :  { %1380 = vsyncadd [#allocation4], 4294967040 }
0x15cf   :  { %1381 = dma.done.wait [#allocation7], 64  }
0x15d0   :  { %1382 = vsyncadd [#allocation7], 4294967232 }
0x15d1   :  { %1070 = vsyncpa [#allocation3], 1 }
0x15d2   :  { %1071 = vsyncpa [#allocation4], 1 }
0x15d3   :  { %1072 = vsyncpa [#allocation7], 1 }

</bundles_post_ra>
